<compile_context>
chip_gen: v5e
topology: v5e:2x2
jax: 0.10.0
libtpu: 0.0.40
codegen_flags: <defaults>
</compile_context>

<pallas_src>
import functools
import math

import jax
import jax.numpy as jnp
from jax.experimental import pallas as pl
from jax.experimental.pallas import tpu as pltpu

LN_EPS = 1e-5                      # PyTorch nn.LayerNorm default eps
_MXU_DTYPE = jnp.bfloat16          # MXU operand dtype (accumulation stays f32)
_VMEM_BUDGET = 24 * 1024 * 1024    # budget for double-buffered pipeline tiles
_VMEM_LIMIT = 48 * 1024 * 1024     # scoped VMEM limit (safe on v5e/v6e/v7x)
_ELEMWISE_LANES = 512              # lane-dense width for elementwise kernels


# ---------------------------------------------------------------------------
# Tiling helpers
# ---------------------------------------------------------------------------
def _round_up(x, m):
    return (x + m - 1) // m * m


def _choose_row_tile(rows, per_row_bytes, vmem_budget_bytes):
    """Pick a row tile from a VMEM budget; prefer multiples of 256 (fills the MXU/DMA)."""
    tm = max(8, vmem_budget_bytes // max(per_row_bytes, 1))
    tm = min(tm, 2048)
    if rows <= tm:
        return _round_up(rows, 8)          # single (padded) block
    if tm >= 256:
        return (tm // 256) * 256
    return max(8, (tm // 8) * 8)


def _choose_col_tile(d_out):
    """Column tile for the weight so (d_in, tn) fits comfortably in VMEM."""
    if d_out <= 2048:
        return d_out
    for tn in (1024, 512, 256, 128):
        if d_out % tn == 0:
            return tn
    return d_out


def _pad_rows(x2d, rows_pad):
    rows = x2d.shape[0]
    if rows_pad == rows:
        return x2d
    return jnp.pad(x2d, ((0, rows_pad - rows), (0, 0)))


# ---------------------------------------------------------------------------
# Kernels
# ---------------------------------------------------------------------------
def _fused_kernel(*refs, apply_ln, apply_residual, n_col_blocks, tn, mxu_dtype):
    """(optional LayerNorm) -> matmul + bias -> (optional residual) in one VMEM pass."""
    if apply_ln:
        x_ref, gb_ref, w_ref, b_ref, o_ref = refs
    else:
        x_ref, w_ref, b_ref, o_ref = refs

    x = x_ref[...].astype(jnp.float32)
    if apply_ln:
        mean = jnp.mean(x, axis=-1, keepdims=True)
        xc = x - mean
        var = jnp.mean(xc * xc, axis=-1, keepdims=True)
        inv = jax.lax.rsqrt(var + LN_EPS)
        gb = gb_ref[...].astype(jnp.float32)           # (2, d_in): [gamma; beta]
        h = xc * inv * gb[0:1, :] + gb[1:2, :]
    else:
        h = x

    acc = jnp.dot(h.astype(mxu_dtype), w_ref[...],
                  preferred_element_type=jnp.float32)
    acc = acc + b_ref[...].astype(jnp.float32)

    # TODO(synk): training-mode dropout (pltpu.prng_* mask) not implemented; eval-mode identity.
    if apply_residual:
        if n_col_blocks == 1:
            x_res = x
        else:
            col = pl.multiple_of(pl.program_id(1) * tn, 128)
            x_res = x_ref[:, pl.ds(col, tn)].astype(jnp.float32)
        acc = acc + x_res

    o_ref[...] = acc.astype(o_ref.dtype)


def _layernorm_kernel(x_ref, gb_ref, o_ref):
    x = x_ref[...].astype(jnp.float32)
    mean = jnp.mean(x, axis=-1, keepdims=True)
    xc = x - mean
    var = jnp.mean(xc * xc, axis=-1, keepdims=True)
    inv = jax.lax.rsqrt(var + LN_EPS)
    gb = gb_ref[...].astype(jnp.float32)
    o_ref[...] = (xc * inv * gb[0:1, :] + gb[1:2, :]).astype(o_ref.dtype)


def _linear_kernel(x_ref, w_ref, b_ref, o_ref, *, mxu_dtype):
    acc = jnp.dot(x_ref[...].astype(mxu_dtype), w_ref[...],
                  preferred_element_type=jnp.float32)
    o_ref[...] = (acc + b_ref[...].astype(jnp.float32)).astype(o_ref.dtype)


def _add_kernel(x_ref, y_ref, o_ref):
    o_ref[...] = x_ref[...] + y_ref[...]


# ---------------------------------------------------------------------------
# Pallas wrappers
# ---------------------------------------------------------------------------
def fused_ln_linear_residual(x2d, w, bias, gamma=None, beta=None, *,
                             apply_ln, apply_residual, mxu_dtype=_MXU_DTYPE):
    """out = [x +] (LN(x) | x) @ W + b, fully fused in one pallas_call."""
    rows, d_in = x2d.shape
    d_out = w.shape[1]
    if apply_residual:
        assert d_out == d_in, "residual connection requires a square sublayer"

    tn = _choose_col_tile(d_out)
    n_col = d_out // tn

    itemsize = jnp.dtype(x2d.dtype).itemsize
    w_bytes = 2 * d_in * tn * jnp.dtype(mxu_dtype).itemsize      # double-buffered W tile
    per_row = 2 * itemsize * d_in + 2 * itemsize * tn            # x + out tiles, double-buffered
    tm = _choose_row_tile(rows, per_row, max(_VMEM_BUDGET - w_bytes, 4 * 1024 * 1024))
    rows_pad = _round_up(rows, tm)
    xp = _pad_rows(x2d, rows_pad)

    operands = [xp]
    in_specs = [pl.BlockSpec((tm, d_in), lambda i, j: (i, 0))]
    if apply_ln:
        operands.append(jnp.stack([gamma, beta]).astype(jnp.float32))
        in_specs.append(pl.BlockSpec((2, d_in), lambda i, j: (0, 0)))
    operands.append(w.astype(mxu_dtype))
    in_specs.append(pl.BlockSpec((d_in, tn), lambda i, j: (0, j)))
    operands.append(bias.reshape(1, d_out).astype(jnp.float32))
    in_specs.append(pl.BlockSpec((1, tn), lambda i, j: (0, j)))

    kernel = functools.partial(
        _fused_kernel, apply_ln=apply_ln, apply_residual=apply_residual,
        n_col_blocks=n_col, tn=tn, mxu_dtype=mxu_dtype)

    cost = pl.CostEstimate(
        flops=2 * rows_pad * d_in * d_out,
        transcendentals=rows_pad if apply_ln else 0,
        bytes_accessed=(rows_pad * d_in * itemsize
                        + d_in * d_out * jnp.dtype(mxu_dtype).itemsize
                        + d_out * 4
                        + rows_pad * d_out * itemsize))

    out = pl.pallas_call(
        kernel,
        out_shape=jax.ShapeDtypeStruct((rows_pad, d_out), x2d.dtype),
        grid_spec=pltpu.PrefetchScalarGridSpec(
            num_scalar_prefetch=0,
            grid=(rows_pad // tm, n_col),
            in_specs=in_specs,
            out_specs=pl.BlockSpec((tm, tn), lambda i, j: (i, j)),
        ),
        compiler_params=pltpu.CompilerParams(
            dimension_semantics=("parallel", "parallel"),
            vmem_limit_bytes=_VMEM_LIMIT),
        cost_estimate=cost,
    )(*operands)
    return out[:rows]


def layernorm_pallas(x2d, gamma, beta):
    rows, d = x2d.shape
    itemsize = jnp.dtype(x2d.dtype).itemsize
    per_row = 4 * itemsize * d                                   # in + out, double-buffered
    tm = _choose_row_tile(rows, per_row, _VMEM_BUDGET)
    rows_pad = _round_up(rows, tm)
    xp = _pad_rows(x2d, rows_pad)
    gb = jnp.stack([gamma, beta]).astype(jnp.float32)
    out = pl.pallas_call(
        _layernorm_kernel,
        out_shape=jax.ShapeDtypeStruct((rows_pad, d), x2d.dtype),
        grid_spec=pltpu.PrefetchScalarGridSpec(
            num_scalar_prefetch=0,
            grid=(rows_pad // tm,),
            in_specs=[pl.BlockSpec((tm, d), lambda i: (i, 0)),
                      pl.BlockSpec((2, d), lambda i: (0, 0))],
            out_specs=pl.BlockSpec((tm, d), lambda i: (i, 0)),
        ),
        compiler_params=pltpu.CompilerParams(
            dimension_semantics=("parallel",),
            vmem_limit_bytes=_VMEM_LIMIT),
    )(xp, gb)
    return out[:rows]


def linear_pallas(x2d, w, bias, *, mxu_dtype=_MXU_DTYPE):
    rows, d_in = x2d.shape
    d_out = w.shape[1]
    tn = _choose_col_tile(d_out)
    n_col = d_out // tn
    itemsize = jnp.dtype(x2d.dtype).itemsize
    w_bytes = 2 * d_in * tn * jnp.dtype(mxu_dtype).itemsize
    per_row = 2 * itemsize * d_in + 2 * itemsize * tn
    tm = _choose_row_tile(rows, per_row, max(_VMEM_BUDGET - w_bytes, 4 * 1024 * 1024))
    rows_pad = _round_up(rows, tm)
    xp = _pad_rows(x2d, rows_pad)
    cost = pl.CostEstimate(
        flops=2 * rows_pad * d_in * d_out,
        transcendentals=0,
        bytes_accessed=(rows_pad * d_in * itemsize
                        + d_in * d_out * jnp.dtype(mxu_dtype).itemsize
                        + d_out * 4
                        + rows_pad * d_out * itemsize))
    out = pl.pallas_call(
        functools.partial(_linear_kernel, mxu_dtype=mxu_dtype),
        out_shape=jax.ShapeDtypeStruct((rows_pad, d_out), x2d.dtype),
        grid_spec=pltpu.PrefetchScalarGridSpec(
            num_scalar_prefetch=0,
            grid=(rows_pad // tm, n_col),
            in_specs=[pl.BlockSpec((tm, d_in), lambda i, j: (i, 0)),
                      pl.BlockSpec((d_in, tn), lambda i, j: (0, j)),
                      pl.BlockSpec((1, tn), lambda i, j: (0, j))],
            out_specs=pl.BlockSpec((tm, tn), lambda i, j: (i, j)),
        ),
        compiler_params=pltpu.CompilerParams(
            dimension_semantics=("parallel", "parallel"),
            vmem_limit_bytes=_VMEM_LIMIT),
        cost_estimate=cost,
    )(xp, w.astype(mxu_dtype), bias.reshape(1, d_out).astype(jnp.float32))
    return out[:rows]


def residual_add_pallas(x, y):
    """Elementwise x + y on a lane-dense flattened view (full-lane, unmasked stores)."""
    assert x.shape == y.shape and x.dtype == y.dtype
    n = x.size
    lane = _ELEMWISE_LANES
    itemsize = jnp.dtype(x.dtype).itemsize
    per_row = 3 * 2 * lane * itemsize                            # 2 in + 1 out, double-buffered
    rows_guess = -(-n // lane)
    tm = _choose_row_tile(rows_guess, per_row, _VMEM_BUDGET)
    n_pad = _round_up(n, tm * lane)
    xf = x.reshape(-1)
    yf = y.reshape(-1)
    if n_pad != n:
        xf = jnp.pad(xf, (0, n_pad - n))
        yf = jnp.pad(yf, (0, n_pad - n))
    rows = n_pad // lane
    out = pl.pallas_call(
        _add_kernel,
        out_shape=jax.ShapeDtypeStruct((rows, lane), x.dtype),
        grid_spec=pltpu.PrefetchScalarGridSpec(
            num_scalar_prefetch=0,
            grid=(rows // tm,),
            in_specs=[pl.BlockSpec((tm, lane), lambda i: (i, 0)),
                      pl.BlockSpec((tm, lane), lambda i: (i, 0))],
            out_specs=pl.BlockSpec((tm, lane), lambda i: (i, 0)),
        ),
        compiler_params=pltpu.CompilerParams(
            dimension_semantics=("parallel",),
            vmem_limit_bytes=_VMEM_LIMIT),
    )(xf.reshape(rows, lane), yf.reshape(rows, lane))
    return out.reshape(-1)[:n].reshape(x.shape)


# ---------------------------------------------------------------------------
# Sublayer + module
# ---------------------------------------------------------------------------
class LinearSublayer:
    """Linear(d_in -> d_out) sublayer whose weights SublayerConnection can fuse with."""

    def __init__(self, w, b):
        self.w = w
        self.b = b

    def __call__(self, x):
        batch, N, T, d = x.shape
        y = linear_pallas(x.reshape(batch * N * T, d), self.w, self.b)
        return y.reshape(batch, N, T, self.w.shape[1])


class SublayerConnection:
    """A residual connection followed by a layer norm (pre-norm form), eval-mode dropout."""

    def __init__(self, size, dropout, residual_connection, use_LayerNorm):
        self.size = size
        self.dropout_rate = dropout
        self.residual_connection = residual_connection
        self.use_LayerNorm = use_LayerNorm
        if self.use_LayerNorm:
            # nn.LayerNorm default init: weight = 1, bias = 0
            self.norm_gamma = jnp.ones((size,), jnp.float32)
            self.norm_beta = jnp.zeros((size,), jnp.float32)

    def __call__(self, x, sublayer):
        """
        :param x: (batch, N, T, d_model)
        :param sublayer: LinearSublayer (fused path) or any callable on (b, N, T, d)
        :return: (batch, N, T, d_model)  (or None for the no-residual/no-LN branch,
                 mirroring the PyTorch forward)
        """
        batch, N, T, d = x.shape
        rows = batch * N * T
        x2d = x.reshape(rows, d)

        if (not self.residual_connection) and (not self.use_LayerNorm):
            # PyTorch forward falls through and returns None; mirror that.
            return None

        fuse = (isinstance(sublayer, LinearSublayer)
                and sublayer.w.shape[0] == d
                and (not self.residual_connection or sublayer.w.shape[1] == d))
        if fuse:
            gamma = self.norm_gamma if self.use_LayerNorm else None
            beta = self.norm_beta if self.use_LayerNorm else None
            out2d = fused_ln_linear_residual(
                x2d, sublayer.w, sublayer.b, gamma, beta,
                apply_ln=self.use_LayerNorm,
                apply_residual=self.residual_connection)
            return out2d.reshape(batch, N, T, out2d.shape[-1])

        # Generic (unfused) path for arbitrary sublayers.
        if self.use_LayerNorm:
            h = layernorm_pallas(x2d, self.norm_gamma, self.norm_beta)
            s = sublayer(h.reshape(batch, N, T, d))
        else:
            s = sublayer(x)
        # TODO(synk): training-mode dropout mask (pltpu.prng_*) not reproduced; eval identity.
        if self.residual_connection:
            return residual_add_pallas(x, s)
        return s


# ---------------------------------------------------------------------------
# Reference helpers + demo
# ---------------------------------------------------------------------------
def _ln_ref(x2d, gamma, beta):
    mean = jnp.mean(x2d, axis=-1, keepdims=True)
    var = jnp.mean((x2d - mean) ** 2, axis=-1, keepdims=True)
    return (x2d - mean) * jax.lax.rsqrt(var + LN_EPS) * gamma + beta


if __name__ == "__main__":
    key = jax.random.PRNGKey(0)
    kx, kw, kb = jax.random.split(key, 3)

    batch, N, T, d_model = 2, 3, 8, 32
    x = jax.random.normal(kx, (batch, N, T, d_model), jnp.float32)

    scale = 1.0 / math.sqrt(d_model)
    w = jax.random.uniform(kw, (d_model, d_model), jnp.float32, -scale, scale)
    b = jax.random.uniform(kb, (d_model,), jnp.float32, -scale, scale)
    lin = LinearSublayer(w, b)

    x2d = x.reshape(-1, d_model)

    # --- residual + LayerNorm (fused kernel path) ------------------------------------
    mod = SublayerConnection(d_model, dropout=0.1,
                             residual_connection=True, use_LayerNorm=True)
    out = jax.block_until_ready(mod(x, lin))
    assert out.shape == x.shape

    h_ref = _ln_ref(x2d, mod.norm_gamma, mod.norm_beta)
    s_ref = jnp.dot(h_ref.astype(_MXU_DTYPE), w.astype(_MXU_DTYPE),
                    preferred_element_type=jnp.float32) + b
    ref = (x2d + s_ref).reshape(x.shape)
    assert jnp.allclose(out, ref, atol=1e-2, rtol=1e-2), "fused LN+linear+residual mismatch"

    # --- same branch through the generic (unfused) kernels ---------------------------
    out_generic = jax.block_until_ready(mod(x, lambda t: lin(t)))
    assert jnp.allclose(out_generic, ref, atol=1e-2, rtol=1e-2), "generic path mismatch"

    # --- residual without LayerNorm ---------------------------------------------------
    mod_nl = SublayerConnection(d_model, dropout=0.1,
                                residual_connection=True, use_LayerNorm=False)
    out_nl = jax.block_until_ready(mod_nl(x, lin))
    s_nl = jnp.dot(x2d.astype(_MXU_DTYPE), w.astype(_MXU_DTYPE),
                   preferred_element_type=jnp.float32) + b
    ref_nl = (x2d + s_nl).reshape(x.shape)
    assert jnp.allclose(out_nl, ref_nl, atol=1e-2, rtol=1e-2), "residual-only mismatch"

    # --- LayerNorm without residual ---------------------------------------------------
    mod_nr = SublayerConnection(d_model, dropout=0.1,
                                residual_connection=False, use_LayerNorm=True)
    out_nr = jax.block_until_ready(mod_nr(x, lin))
    ref_nr = s_ref.reshape(x.shape)
    assert jnp.allclose(out_nr, ref_nr, atol=1e-2, rtol=1e-2), "LN-only mismatch"

    print("KERNEL_OK")
</pallas_src>

<mosaic_0001>
module attributes {stable_mosaic.version = 11 : i64} {
  func.func @_fused_kernel(%arg0: i32, %arg1: i32, %arg2: memref<48x32xf32, #tpu.memory_space<vmem>>, %arg3: memref<2x32xf32, #tpu.memory_space<vmem>>, %arg4: memref<32x32xbf16, #tpu.memory_space<vmem>>, %arg5: memref<1x32xf32, #tpu.memory_space<vmem>>, %arg6: memref<48x32xf32, #tpu.memory_space<vmem>>) attributes {dimension_semantics = [#tpu.dimension_semantics<parallel>, #tpu.dimension_semantics<parallel>], iteration_bounds = array<i64: 1, 1>, scalar_prefetch = 0 : i64, scratch_operands = 0 : i64, tpu.core_type = #tpu.core_type<tc>, window_params = [{transform_indices = @transform_0, window_bounds = array<i64: 48, 32>}, {pipeline_mode = #tpu.pipeline_mode<synchronous>, transform_indices = @transform_1, window_bounds = array<i64: 2, 32>}, {transform_indices = @transform_2, window_bounds = array<i64: 32, 32>}, {transform_indices = @transform_3, window_bounds = array<i64: 1, 32>}, {transform_indices = @transform_4, window_bounds = array<i64: 48, 32>}]} {
    %c0 = arith.constant 0 : index
    %c0_0 = arith.constant 0 : index
    %0 = vector.load %arg2[%c0, %c0_0] : memref<48x32xf32, #tpu.memory_space<vmem>>, vector<48x32xf32>
    %cst = arith.constant dense<0.000000e+00> : vector<48xf32>
    %1 = vector.multi_reduction <add>, %0, %cst [1] : vector<48x32xf32> to vector<48xf32>
    %2 = vector.shape_cast %1 : vector<48xf32> to vector<48x1xf32>
    %cst_1 = arith.constant 3.200000e+01 : f32
    %3 = vector.broadcast %cst_1 : f32 to vector<48x1xf32>
    %4 = arith.divf %2, %3 : vector<48x1xf32>
    %5 = vector.broadcast %4 : vector<48x1xf32> to vector<48x32xf32>
    %6 = arith.subf %0, %5 : vector<48x32xf32>
    %7 = arith.mulf %6, %6 : vector<48x32xf32>
    %cst_2 = arith.constant dense<0.000000e+00> : vector<48xf32>
    %8 = vector.multi_reduction <add>, %7, %cst_2 [1] : vector<48x32xf32> to vector<48xf32>
    %9 = vector.shape_cast %8 : vector<48xf32> to vector<48x1xf32>
    %cst_3 = arith.constant 3.200000e+01 : f32
    %10 = vector.broadcast %cst_3 : f32 to vector<48x1xf32>
    %11 = arith.divf %9, %10 : vector<48x1xf32>
    %cst_4 = arith.constant 9.99999974E-6 : f32
    %12 = vector.broadcast %cst_4 : f32 to vector<48x1xf32>
    %13 = arith.addf %11, %12 : vector<48x1xf32>
    %14 = math.rsqrt %13 : vector<48x1xf32>
    %c0_5 = arith.constant 0 : index
    %c0_6 = arith.constant 0 : index
    %15 = vector.load %arg3[%c0_5, %c0_6] : memref<2x32xf32, #tpu.memory_space<vmem>>, vector<2x32xf32>
    %16 = vector.broadcast %14 : vector<48x1xf32> to vector<48x32xf32>
    %17 = arith.mulf %6, %16 : vector<48x32xf32>
    %18 = vector.extract_strided_slice %15 {offsets = [0, 0], sizes = [1, 32], strides = [1, 1]} : vector<2x32xf32> to vector<1x32xf32>
    %19 = vector.broadcast %18 : vector<1x32xf32> to vector<48x32xf32>
    %20 = arith.mulf %17, %19 : vector<48x32xf32>
    %21 = vector.extract_strided_slice %15 {offsets = [1, 0], sizes = [1, 32], strides = [1, 1]} : vector<2x32xf32> to vector<1x32xf32>
    %22 = vector.broadcast %21 : vector<1x32xf32> to vector<48x32xf32>
    %23 = arith.addf %20, %22 : vector<48x32xf32>
    %24 = arith.truncf %23 : vector<48x32xf32> to vector<48x32xbf16>
    %c0_7 = arith.constant 0 : index
    %c0_8 = arith.constant 0 : index
    %25 = vector.load %arg4[%c0_7, %c0_8] : memref<32x32xbf16, #tpu.memory_space<vmem>>, vector<32x32xbf16>
    %cst_9 = arith.constant dense<0.000000e+00> : vector<48x32xf32>
    %26 = tpu.matmul %24, %25, %cst_9 {dimension_numbers = #tpu.dot_dimension_numbers<[1], [0], [0], [1], [0, 0, 1, 1], [], []>} : vector<48x32xbf16>, vector<32x32xbf16>, vector<48x32xf32> -> vector<48x32xf32>
    %c0_10 = arith.constant 0 : index
    %c0_11 = arith.constant 0 : index
    %27 = vector.load %arg5[%c0_10, %c0_11] : memref<1x32xf32, #tpu.memory_space<vmem>>, vector<1x32xf32>
    %28 = vector.broadcast %27 : vector<1x32xf32> to vector<48x32xf32>
    %29 = arith.addf %26, %28 : vector<48x32xf32>
    %30 = arith.addf %29, %0 : vector<48x32xf32>
    %c0_12 = arith.constant 0 : index
    %c0_13 = arith.constant 0 : index
    %31 = vector.load %arg6[%c0_12, %c0_13] : memref<48x32xf32, #tpu.memory_space<vmem>>, vector<48x32xf32>
    tpu.vector_store %arg6[%c0_12, %c0_13], %30 {strides = array<i32>} : memref<48x32xf32, #tpu.memory_space<vmem>>, vector<48x32xf32>,
    return
  }
  func.func @transform_0(%arg0: i32, %arg1: i32) -> (i32, i32) {
    %c0_i32 = arith.constant 0 : i32
    %c0_i32_0 = arith.constant 0 : i32
    return %arg0, %c0_i32 : i32, i32
  }
  func.func @transform_1(%arg0: i32, %arg1: i32) -> (i32, i32) {
    %c0_i32 = arith.constant 0 : i32
    %c0_i32_0 = arith.constant 0 : i32
    %c0_i32_1 = arith.constant 0 : i32
    return %c0_i32, %c0_i32_0 : i32, i32
  }
  func.func @transform_2(%arg0: i32, %arg1: i32) -> (i32, i32) {
    %c0_i32 = arith.constant 0 : i32
    %c0_i32_0 = arith.constant 0 : i32
    return %c0_i32, %arg1 : i32, i32
  }
  func.func @transform_3(%arg0: i32, %arg1: i32) -> (i32, i32) {
    %c0_i32 = arith.constant 0 : i32
    %c0_i32_0 = arith.constant 0 : i32
    return %c0_i32, %arg1 : i32, i32
  }
  func.func @transform_4(%arg0: i32, %arg1: i32) -> (i32, i32) {
    %c0_i32 = arith.constant 0 : i32
    return %arg0, %arg1 : i32, i32
  }
}

</mosaic_0001>

<bundles_post_ra>
// kernel: tpu_custom_call.1
= control target key start
LH: loop header
LB: loop body
LE: loop exit
PB: predicated region body
PF: predicated region fallthrough
CT: control target
= control target key end

     0   :  { %vm24_vm0 = vcmask 261120   ;;  %v284_v12 = vmov 32.0   ;;  %s472_s0 = inlined_call_operand.vmem [shape: f32[48,32], index: 0, kind: input, shape index: {}]   ;;  %s473_s3 = inlined_call_operand.vmem [shape: f32[1,32], index: 3, kind: input, shape index: {}]   ;;  %s474_s2 = inlined_call_operand.vmem [shape: bf16[32,32], index: 2, kind: input, shape index: {}]   ;;  %s475_s1 = inlined_call_operand.vmem [shape: f32[2,32], index: 1, kind: input, shape index: {}]   ;;  %s476_s4 = inlined_call_operand.vmem [shape: f32[48,32], index: 4, kind: output, shape index: {}]  }
   0x1   :  { %v313_v0 = vld [vmem:[%s472_s0 + $0x20] sm:$0xff]  ;;  %v318_v1 = vld [vmem:[%s472_s0 + $0x10] sm:$0xff]  ;;  %v334_v6 = vld [vmem:[%s472_s0 + $0x28] sm:$0xff]  ;;  %270 = vrcp.f32 %v284_v12 }
   0x2   :  { %v323_v2 = vld [vmem:[%s472_s0] sm:$0xff]  ;;  %v37_v3 = vsel %vm24_vm0, %v313_v0, 0.0  ;;  %v31_v4 = vsel %vm24_vm0, %v318_v1, 0.0  ;;  %v339_v7 = vld [vmem:[%s472_s0 + $0x18] sm:$0xff]  ;;  %v344_v8 = vld [vmem:[%s472_s0 + $0x8] sm:$0xff]  ;;  %v40_v9 = vsel %vm24_vm0, %v334_v6, 0.0 }
   0x3   :  { %v25_v5 = vsel %vm24_vm0, %v323_v2, 0.0  ;;  %38 = vadd.xlane.f32.xlu0 %v37_v3  ;;  %32 = vadd.xlane.f32.xlu2 %v31_v4  ;;  %v34_v10 = vsel %vm24_vm0, %v339_v7, 0.0  ;;  %v28_v11 = vsel %vm24_vm0, %v344_v8, 0.0  ;;  %v263_v50 = vld [vmem:[%s474_s2 + $0x8] sm:$0xff]  ;;  %v262_v56 = vld [vmem:[%s474_s2] sm:$0xff] }
   0x4   :  { %26 = vadd.xlane.f32.xlu1 %v25_v5  ;;  %217 = vmatpush.bf16.msra.mxu0 %v263_v50 }
   0x5   :  { %265 = vmatpush.bf16.msra.mxu2 %v263_v50  ;;  %264 = vmatpush.bf16.msra.mxu1 %v263_v50 }
   0x7   :  { %v271_v13 = vpop.eup %270 }
   0x8   :  { %v44_v14 = vmul.f32 32.0, %v271_v13  ;;  %vm48_vm1 = vweird.f32 %v271_v13  ;;  %218 = vmatpush.bf16.msra.mxu0 %v262_v56 }
   0x9   :  { %267 = vmatpush.bf16.msra.mxu2 %v262_v56  ;;  %266 = vmatpush.bf16.msra.mxu1 %v262_v56 }
   0xa   :  { %v45_v15 = vsub.f32 1.0, %v44_v14 }
   0xb   :  { %41 = vadd.xlane.f32.xlu0 %v40_v9  ;;  %35 = vadd.xlane.f32.xlu2 %v34_v10 }
   0xc   :  { %29 = vadd.xlane.f32.xlu1 %v28_v11  ;;  %v46_v16 = vmul.f32 %v271_v13, %v45_v15 }
   0xe   :  { %v47_v17 = vadd.f32 %v271_v13, %v46_v16 }
  0x10   :  { %v352_v18 = vsel %vm48_vm1, %v271_v13, %v47_v17 }
  0x76   :  { %v39_v19 = vpop.xlane.xlu0 %38  ;;  %v33_v20 = vpop.xlane.xlu2 %32 }
  0x77   :  { %v54_v21 = vmul.f32 %v352_v18, %v39_v19  ;;  %v27_v22 = vpop.xlane.xlu1 %26  ;;  %v52_v36 = vmul.f32 %v352_v18, %v33_v20 }
  0x78   :  { %v50_v23 = vmul.f32 %v352_v18, %v27_v22 }
  0x79   :  { %v357_v24 = vsub.f32 %v313_v0, %v54_v21  ;;  %v388_v43 = vsub.f32 %v318_v1, %v52_v36 }
  0x7a   :  { %v360_v25 = vsub.f32 %v323_v2, %v50_v23 }
  0x7b   :  { %v66_v26 = vmul.f32 %v357_v24, %v357_v24  ;;  %v64_v47 = vmul.f32 %v388_v43, %v388_v43 }
  0x7c   :  { %v62_v27 = vmul.f32 %v360_v25, %v360_v25 }
  0x7d   :  { %v80_v28 = vsel %vm24_vm0, %v66_v26, 0.0  ;;  %v74_v48 = vsel %vm24_vm0, %v64_v47, 0.0 }
  0x7e   :  { %81 = vadd.xlane.f32.xlu0 %v80_v28  ;;  %v42_v29 = vpop.xlane.xlu0 %41  ;;  %v36_v30 = vpop.xlane.xlu2 %35  ;;  %v68_v31 = vsel %vm24_vm0, %v62_v27, 0.0 }
  0x7f   :  { %v55_v32 = vmul.f32 %v352_v18, %v42_v29  ;;  %v53_v33 = vmul.f32 %v352_v18, %v36_v30  ;;  %69 = vadd.xlane.f32.xlu2 %v68_v31  ;;  %v30_v34 = vpop.xlane.xlu1 %29 }
  0x80   :  { %v51_v35 = vmul.f32 %v352_v18, %v30_v34 }
  0x81   :  { %v373_v37 = vsub.f32 %v334_v6, %v55_v32  ;;  %v376_v38 = vsub.f32 %v339_v7, %v53_v33 }
  0x82   :  { %v379_v39 = vsub.f32 %v344_v8, %v51_v35 }
  0x83   :  { %v67_v40 = vmul.f32 %v373_v37, %v373_v37  ;;  %v65_v41 = vmul.f32 %v376_v38, %v376_v38 }
  0x84   :  { %v63_v42 = vmul.f32 %v379_v39, %v379_v39 }
  0x85   :  { %v83_v44 = vsel %vm24_vm0, %v67_v40, 0.0  ;;  %v77_v45 = vsel %vm24_vm0, %v65_v41, 0.0 }
  0x86   :  { %84 = vadd.xlane.f32.xlu1 %v83_v44  ;;  %v71_v46 = vsel %vm24_vm0, %v63_v42, 0.0 }
  0x87   :  { %78 = vadd.xlane.f32.xlu2 %v77_v45  ;;  %72 = vadd.xlane.f32.xlu0 %v71_v46 }
  0x8e   :  { %75 = vadd.xlane.f32.xlu1 %v74_v48 }
  0xf1   :  { %v82_v49 = vpop.xlane.xlu0 %81 }
  0xf2   :  { %v90_v51 = vmul.f32 %v82_v49, %v352_v18  ;;  %v70_v52 = vpop.xlane.xlu2 %69 }
  0xf3   :  { %v86_v53 = vmul.f32 %v70_v52, %v352_v18 }
  0xf4   :  { %v96_v54 = vadd.f32 1e-05, %v90_v51 }
  0xf5   :  { %v92_v55 = vadd.f32 1e-05, %v86_v53 }
  0xf6   :  { %272 = vrsqrt.f32 %v96_v54  ;;  %vm144_vm3 = vweird.f32 %v96_v54 }
  0xf7   :  { %274 = vrsqrt.f32 %v92_v55  ;;  %vm104_vm4 = vweird.f32 %v92_v55 }
  0xf9   :  { %v85_v57 = vpop.xlane.xlu1 %84 }
  0xfa   :  { %v79_v58 = vpop.xlane.xlu2 %78  ;;  %v73_v59 = vpop.xlane.xlu0 %72  ;;  %v91_v60 = vmul.f32 %v85_v57, %v352_v18 }
  0xfb   :  { %v89_v61 = vmul.f32 %v79_v58, %v352_v18  ;;  %v87_v62 = vmul.f32 %v73_v59, %v352_v18 }
  0xfc   :  { %v273_v63 = vpop.eup %272  ;;  %v97_v3 = vadd.f32 1e-05, %v91_v60 }
  0xfd   :  { %v275_v4 = vpop.eup %274  ;;  %v139_v5 = vmul.f32 %v273_v63, %v96_v54  ;;  %v95_v9 = vadd.f32 1e-05, %v89_v61  ;;  %v93_v10 = vadd.f32 1e-05, %v87_v62  ;;  %vm145_vm2 = vweird.f32 %v273_v63 }
  0xfe   :  { %v99_v11 = vmul.f32 %v275_v4, %v92_v55  ;;  %276 = vrsqrt.f32 %v97_v3  ;;  %vm105_vm5 = vweird.f32 %v275_v4  ;;  %vm146_vm6 = vmor %vm144_vm3, %vm145_vm2  ;;  %vm154_vm9 = vweird.f32 %v97_v3 }
  0xff   :  { %v140_v12 = vmul.f32 %v273_v63, %v139_v5  ;;  %278 = vrsqrt.f32 %v95_v9  ;;  %vm414_vm7 = vmor %vm104_vm4, %vm105_vm5  ;;  %vm134_vm8 = vweird.f32 %v95_v9  ;;  %vm114_vm12 = vweird.f32 %v93_v10 }
 0x100   :  { %v100_v13 = vmul.f32 %v275_v4, %v99_v11  ;;  %280 = vrsqrt.f32 %v93_v10 }
 0x101   :  { %v141_v14 = vmul.f32 0.5, %v140_v12  ;;  %v76_v15 = vpop.xlane.xlu1 %75 }
 0x102   :  { %v101_v16 = vmul.f32 0.5, %v100_v13  ;;  %v88_v17 = vmul.f32 %v76_v15, %v352_v18  ;;  %v158_v18 = vld [vmem:[%s475_s1] sm:$0x3] }
 0x103   :  { %v142_v19 = vsub.f32 1.5, %v141_v14  ;;  %v165_v42 = vperm.slane %v158_v18, 0  ;;  %v172_v59 = vperm.slane %v158_v18, 1 }
 0x104   :  { %v277_v20 = vpop.eup %276  ;;  %v102_v21 = vsub.f32 1.5, %v101_v16  ;;  %v408_v22 = vadd.f32 1e-05, %v88_v17 }
 0x105   :  { %v279_v23 = vpop.eup %278  ;;  %v143_v26 = vmul.f32 %v273_v63, %v142_v19  ;;  %v149_v27 = vmul.f32 %v277_v20, %v97_v3  ;;  %vm155_vm10 = vweird.f32 %v277_v20 }
 0x106   :  { %v281_v28 = vpop.eup %280  ;;  %v129_v29 = vmul.f32 %v279_v23, %v95_v9  ;;  %282 = vrsqrt.f32 %v408_v22  ;;  %v103_v30 = vmul.f32 %v275_v4, %v102_v21  ;;  %vm135_vm11 = vweird.f32 %v279_v23  ;;  %vm156_vm14 = vmor %vm154_vm9, %vm155_vm10 }
 0x107   :  { %v109_v31 = vmul.f32 %v281_v28, %v93_v10  ;;  %v150_v32 = vmul.f32 %v277_v20, %v149_v27  ;;  %v147_v34 = vsel %vm146_vm6, %v273_v63, %v143_v26  ;;  %vm115_vm13 = vweird.f32 %v281_v28  ;;  %vm425_vm15 = vmor %vm134_vm8, %vm135_vm11 }
 0x108   :  { %v130_v33 = vmul.f32 %v279_v23, %v129_v29  ;;  %v107_v44 = vsel %vm414_vm7, %v275_v4, %v103_v30  ;;  %v163_v48 = vmul.f32 %v147_v34, %v357_v24  ;;  %vm116_vm1 = vmor %vm114_vm12, %vm115_vm13  ;;  %vm124_vm3 = vweird.f32 %v408_v22 }
 0x109   :  { %v110_v35 = vmul.f32 %v281_v28, %v109_v31  ;;  %v151_v36 = vmul.f32 0.5, %v150_v32  ;;  %v159_v53 = vmul.f32 %v107_v44, %v360_v25 }
 0x10a   :  { %v131_v41 = vmul.f32 0.5, %v130_v33  ;;  %v170_v60 = vmul.f32 %v165_v42, %v163_v48 }
 0x10b   :  { %v111_v45 = vmul.f32 0.5, %v110_v35  ;;  %v152_v46 = vsub.f32 1.5, %v151_v36  ;;  %v166_v3 = vmul.f32 %v165_v42, %v159_v53 }
 0x10c   :  { %v283_v47 = vpop.eup %282  ;;  %v132_v49 = vsub.f32 1.5, %v131_v41  ;;  %v177_v11 = vadd.f32 %v172_v59, %v170_v60 }
 0x10d   :  { %v112_v50 = vsub.f32 1.5, %v111_v45  ;;  %v153_v51 = vmul.f32 %v277_v20, %v152_v46  ;;  %v119_v52 = vmul.f32 %v283_v47, %v408_v22  ;;  %vm125_vm2 = vweird.f32 %v283_v47  ;;  %v269_v22 = vld [vmem:[%s473_s3] ss:$0 sm:$0xff] }
 0x10e   :  { %v133_v54 = vmul.f32 %v279_v23, %v132_v49  ;;  %vm126_vm4 = vmor %vm124_vm3, %vm125_vm2 }
 0x10f   :  { %v113_v56 = vmul.f32 %v281_v28, %v112_v50  ;;  %v157_v24 = vsel %vm156_vm14, %v277_v20, %v153_v51  ;;  %v120_v57 = vmul.f32 %v283_v47, %v119_v52 }
 0x110   :  { %v164_v58 = vmul.f32 %v157_v24, %v373_v37  ;;  %v137_v61 = vsel %vm425_vm15, %v279_v23, %v133_v54  ;;  %v173_v37 = vadd.f32 %v172_v59, %v166_v3 }
 0x111   :  { %v117_v25 = vsel %vm116_vm1, %v281_v28, %v113_v56  ;;  %v121_v62 = vmul.f32 0.5, %v120_v57  ;;  %v162_v9 = vmul.f32 %v137_v61, %v376_v38 }
 0x112   :  { %v160_v63 = vmul.f32 %v117_v25, %v379_v39  ;;  %v171_v4 = vmul.f32 %v165_v42, %v164_v58 }
 0x113   :  { %v122_v5 = vsub.f32 1.5, %v121_v62  ;;  %v169_v19 = vmul.f32 %v165_v42, %v162_v9 }
 0x114   :  { %v167_v10 = vmul.f32 %v165_v42, %v160_v63  ;;  %v178_v12 = vadd.f32 %v172_v59, %v171_v4 }
 0x115   :  { %v123_v13 = vmul.f32 %v283_v47, %v122_v5  ;;  %v176_v21 = vadd.f32 %v172_v59, %v169_v19 }
 0x116   :  { %v174_v14 = vadd.f32 %v172_v59, %v167_v10  ;;  %v181_v15 = vpack.c.bf16 %v178_v12, %v177_v11 }
 0x117   :  { %v127_v16 = vsel %vm126_vm4, %v283_v47, %v123_v13 }
 0x118   :  { %v161_v17 = vmul.f32 %v127_v16, %v388_v43  ;;  %v179_v39 = vpack.c.bf16 %v174_v14, %v173_v37  ;;  %261 = vmatmul.msk.bf16.vlgmr.msra.gmra.mxu2 %vm24_vm0, %v181_v15 }
 0x11a   :  { %259 = vmatmul.msk.bf16.vlgmr.msra.gmra.mxu0 %vm24_vm0, %v179_v39  ;;  %v168_v38 = vmul.f32 %v165_v42, %v161_v17 }
 0x11c   :  { %v175_v20 = vadd.f32 %v172_v59, %v168_v38 }
 0x11e   :  { %v180_v23 = vpack.c.bf16 %v176_v21, %v175_v20 }
 0x120   :  { %260 = vmatmul.msk.bf16.vlgmr.msra.gmra.mxu1 %vm24_vm0, %v180_v23 }
 0x197   :  { %v220_v26 = vpop.f32.mrf.mxu0 }
 0x198   :  { %v221_v27 = vadd.f32 %v269_v22, %v220_v26 }
 0x19a   :  { %v235_v43 = vadd.f32 %v221_v27, %v323_v2 }
 0x19b   :  { %v230_v28 = vpop.f32.mrf.mxu2 }
 0x19c   :  { %241 = vst.msk [vmem:[%s476_s4] sm:$0xff] %vm24_vm0, %v235_v43  ;;  %v231_v29 = vadd.f32 %v269_v22, %v230_v28 }
 0x19d   :  { %v225_v30 = vpop.f32.mrf.mxu1 }
 0x19e   :  { %v239_v31 = vadd.f32 %v231_v29, %v313_v0  ;;  %v226_v32 = vadd.f32 %v269_v22, %v225_v30 }
 0x19f   :  { %v222_v18 = vpop.f32.mrf.mxu0 }
 0x1a0   :  { %245 = vst.msk [vmem:[%s476_s4 + $0x20] sm:$0xff] %vm24_vm0, %v239_v31  ;;  %v223_v33 = vadd.f32 %v269_v22, %v222_v18  ;;  %v237_v2 = vadd.f32 %v226_v32, %v318_v1 }
 0x1a2   :  { %v236_v34 = vadd.f32 %v223_v33, %v344_v8  ;;  %243 = vst.msk [vmem:[%s476_s4 + $0x10] sm:$0xff] %vm24_vm0, %v237_v2 }
 0x1a3   :  { %v232_v35 = vpop.f32.mrf.mxu2 }
 0x1a4   :  { %242 = vst.msk [vmem:[%s476_s4 + $0x8] sm:$0xff] %vm24_vm0, %v236_v34  ;;  %v233_v0 = vadd.f32 %v269_v22, %v232_v35 }
 0x1a5   :  { %v227_v36 = vpop.f32.mrf.mxu1 }
 0x1a6   :  { %v240_v40 = vadd.f32 %v233_v0, %v334_v6  ;;  %v228_v41 = vadd.f32 %v269_v22, %v227_v36 }
 0x1a8   :  { %246 = vst.msk [vmem:[%s476_s4 + $0x28] sm:$0xff] %vm24_vm0, %v240_v40  ;;  %v238_v1 = vadd.f32 %v228_v41, %v339_v7 }
 0x1aa   :  { %244 = vst.msk [vmem:[%s476_s4 + $0x18] sm:$0xff] %vm24_vm0, %v238_v1 }

</bundles_post_ra>
